<compile_context>
chip_gen: v6e
topology: v6e:2x2x1
jax: 0.10.0
libtpu: 0.0.40
codegen_flags: <defaults>
</compile_context>

<pallas_src>
import functools
import numpy as np
import jax
import jax.numpy as jnp
from jax.experimental import pallas as pl
from jax.experimental.pallas import tpu as pltpu


def _mapping_kernel(x_ref, w0_ref, b0_ref, w1_ref, b1_ref, w2_ref, b2_ref,
                    o_ref, *, slope, eps):
    x = x_ref[...]                                          # [TN, F] bf16

    def lin(h_bf16, w_ref, b_ref):
        # bf16 operands, f32 accumulation on the MXU; bias add in f32 on VPU.
        return (jnp.dot(h_bf16, w_ref[...],
                        preferred_element_type=jnp.float32)
                + b_ref[...])

    def leaky(h):                                           # LeakyReLU(0.001)
        return jnp.maximum(h, slope * h)                    # valid for 0<slope<1

    def ln(h):                                              # LayerNorm, no affine
        inv_d = 1.0 / h.shape[-1]
        s1 = jnp.sum(h, axis=-1, keepdims=True)
        s2 = jnp.sum(h * h, axis=-1, keepdims=True)
        mu = s1 * inv_d
        var = jnp.maximum(s2 * inv_d - mu * mu, 0.0)        # guard tiny cancellation
        return (h - mu) * jax.lax.rsqrt(var + eps)

    h = ln(leaky(lin(x, w0_ref, b0_ref)))
    h = ln(leaky(lin(h.astype(jnp.bfloat16), w1_ref, b1_ref)))
    # Last layer: no activation / norm.
    o_ref[...] = lin(h.astype(jnp.bfloat16), w2_ref, b2_ref).astype(o_ref.dtype)


def _vmem_capacity_bytes():
    try:
        return int(pltpu.get_tpu_info().vmem_capacity_bytes)
    except Exception:
        return 64 << 20       # conservative (v7x per-TC VMEM)


def _pick_token_tile(N, F, H, O_pad, token_tile, vmem_cap):
    """Generation-aware token-tile size."""
    weight_bytes = (F * H + H * H + H * O_pad) * 2 + (2 * H + O_pad) * 4
    budget = int(vmem_cap * 0.7) - weight_bytes
    # double-buffered in/out token tiles + f32 activation scratch per token
    per_tok = 2 * (F * 2 + O_pad * 4) + 4 * H * 4
    cap = max(16, budget // max(per_tok, 1))
    tn = min(token_tile, cap, max(N, 16))
    for m in (256, 128, 16):                 # MXU-full passes; 16 = bf16 sublane pack
        if tn >= m:
            tn = (tn // m) * m
            break
    tn = max(16, tn)
    # Ensure >= 2 grid tiles when N allows, so the "parallel" axis can split
    # across v7x's two TensorCores (harmless on v5e/v6e).
    if N > 16 and -(-N // tn) < 2:
        tn = max(16, ((-(-N // 2) + 15) // 16) * 16)
    return tn


def mapping_layer_forward(x, params, *, token_tile=512):
    """Pallas implementation of MappingLayer.forward (inference semantics)."""
    if x.ndim == 2:
        x = x[None]
    assert x.ndim == 3, "MappingLayer: input must be [batch, seq, feat]"
    B, S, F = x.shape
    N = B * S

    w0, b0 = params["w0"], params["b0"]
    w1, b1 = params["w1"], params["b1"]
    w2, b2 = params["w2"], params["b2"]
    H = w0.shape[1]
    O = w2.shape[1]

    # Lane-dense output: pad final feature dim to a multiple of 128 via zero
    # weight/bias columns (padded columns give exact zeros, sliced off below).
    O_pad = ((O + 127) // 128) * 128
    w2p = jnp.pad(w2, ((0, 0), (0, O_pad - O)))
    b2p = jnp.pad(b2, (0, O_pad - O))

    # bf16 matmul operands (cast once); biases stay f32 for the f32 add.
    w0b = w0.astype(jnp.bfloat16)
    w1b = w1.astype(jnp.bfloat16)
    w2b = w2p.astype(jnp.bfloat16)
    b0r = b0.reshape(1, H).astype(jnp.float32)
    b1r = b1.reshape(1, H).astype(jnp.float32)
    b2r = b2p.reshape(1, O_pad).astype(jnp.float32)

    # Token tiling (generation-aware) and padding to whole tiles.
    vmem_cap = _vmem_capacity_bytes()
    TN = _pick_token_tile(N, F, H, O_pad, int(token_tile), vmem_cap)
    N_pad = pl.cdiv(N, TN) * TN
    x_flat = x.reshape(N, F).astype(jnp.bfloat16)           # bf16 input: half DMA
    if N_pad != N:
        x_flat = jnp.pad(x_flat, ((0, N_pad - N), (0, 0)))

    kernel = functools.partial(_mapping_kernel, slope=0.001, eps=1e-5)

    def resident(shape):
        # Constant block index every grid step -> VMEM-resident; Buffered(1)
        # because double-buffering a never-changing block is wasted VMEM.
        return pl.BlockSpec(shape, lambda i: (0, 0),
                            pipeline_mode=pl.Buffered(1))

    # VMEM budget: single-buffered weights + double-buffered token tiles
    # + activation scratch, with ~30% headroom, clamped to physical VMEM.
    weight_bytes = (F * H + H * H + H * O_pad) * 2 + (2 * H + O_pad) * 4
    tile_bytes = 2 * (TN * F * 2 + TN * O_pad * 4)
    act_bytes = 4 * TN * H * 4
    need = weight_bytes + tile_bytes + act_bytes
    vmem_limit = int(min(vmem_cap, max(int(need * 1.3), 32 << 20)))

    flops = 2 * N_pad * (F * H + H * H + H * O_pad)
    bytes_accessed = (N_pad * F * 2 + weight_bytes + N_pad * O_pad * 4)

    out = pl.pallas_call(
        kernel,
        out_shape=jax.ShapeDtypeStruct((N_pad, O_pad), jnp.float32),
        grid=(N_pad // TN,),
        in_specs=[
            pl.BlockSpec((TN, F), lambda i: (i, 0)),        # token tile (bf16)
            resident((F, H)), resident((1, H)),             # layer 0
            resident((H, H)), resident((1, H)),             # layer 1
            resident((H, O_pad)), resident((1, O_pad)),     # layer 2 (lane-padded)
        ],
        out_specs=pl.BlockSpec((TN, O_pad), lambda i: (i, 0)),
        compiler_params=pltpu.CompilerParams(
            dimension_semantics=("parallel",),              # independent token tiles
            vmem_limit_bytes=vmem_limit),
        cost_estimate=pl.CostEstimate(flops=flops,
                                      transcendentals=2 * N_pad,
                                      bytes_accessed=bytes_accessed),
    )(x_flat, w0b, b0r, w1b, b1r, w2b, b2r)

    return out[:N, :O].reshape(B, S, O)


def init_params(key, input_dim, hidden_dim, max_num_nodes):
    dims = [input_dim, hidden_dim, hidden_dim, max_num_nodes]
    keys = jax.random.split(key, 6)
    params = {}
    for li in range(3):
        din, dout = dims[li], dims[li + 1]
        params[f"w{li}"] = jax.random.normal(keys[2 * li], (din, dout),
                                             jnp.float32) * 0.1
        params[f"b{li}"] = jax.random.normal(keys[2 * li + 1], (dout,),
                                             jnp.float32) * 0.05
    return params


def reference_forward(x, params):
    """Plain-JAX f32 reference matching the PyTorch forward semantics."""
    if x.ndim == 2:
        x = x[None]
    B, S, F = x.shape
    h = x.reshape(-1, F).astype(jnp.float32)

    def leaky(v):
        return jnp.where(v > 0, v, 0.001 * v)

    def ln(v):
        mu = jnp.mean(v, axis=-1, keepdims=True)
        var = jnp.mean((v - mu) ** 2, axis=-1, keepdims=True)
        return (v - mu) / jnp.sqrt(var + 1e-5)

    h = ln(leaky(h @ params["w0"] + params["b0"]))
    h = ln(leaky(h @ params["w1"] + params["b1"]))
    h = h @ params["w2"] + params["b2"]
    return h.reshape(B, S, -1)


if __name__ == "__main__":
    B, S = 2, 16
    input_dim, hidden_dim, max_num_nodes = 32, 32, 16

    key = jax.random.PRNGKey(0)
    kx, kp = jax.random.split(key)
    x = jax.random.normal(kx, (B, S, input_dim), jnp.float32)
    params = init_params(kp, input_dim, hidden_dim, max_num_nodes)

    # Auto-picked TN at this size gives a 2-tile grid (exercises pipelining
    # and the v7x 2-TC split path).
    out = mapping_layer_forward(x, params)
    out = jax.block_until_ready(out)

    ref = jax.block_until_ready(reference_forward(x, params))
    assert out.shape == (B, S, max_num_nodes)
    # bf16 matmul operands vs f32 reference -> loose but safe tolerance.
    np.testing.assert_allclose(np.asarray(out), np.asarray(ref),
                               atol=5e-2, rtol=5e-2)

    print("KERNEL_OK")
</pallas_src>

<mosaic_0001>
module attributes {stable_mosaic.version = 11 : i64} {
  func.func @_mapping_kernel(%arg0: i32, %arg1: memref<16x32xbf16, #tpu.memory_space<vmem>>, %arg2: memref<32x32xbf16, #tpu.memory_space<vmem>>, %arg3: memref<1x32xf32, #tpu.memory_space<vmem>>, %arg4: memref<32x32xbf16, #tpu.memory_space<vmem>>, %arg5: memref<1x32xf32, #tpu.memory_space<vmem>>, %arg6: memref<32x128xbf16, #tpu.memory_space<vmem>>, %arg7: memref<1x128xf32, #tpu.memory_space<vmem>>, %arg8: memref<16x128xf32, #tpu.memory_space<vmem>>) attributes {dimension_semantics = [#tpu.dimension_semantics<parallel>], iteration_bounds = array<i64: 2>, scalar_prefetch = 0 : i64, scratch_operands = 0 : i64, tpu.core_type = #tpu.core_type<tc>, window_params = [{transform_indices = @transform_0, window_bounds = array<i64: 16, 32>}, {pipeline_mode = #tpu.pipeline_mode<synchronous>, transform_indices = @transform_1, window_bounds = array<i64: 32, 32>}, {pipeline_mode = #tpu.pipeline_mode<synchronous>, transform_indices = @transform_2, window_bounds = array<i64: 1, 32>}, {pipeline_mode = #tpu.pipeline_mode<synchronous>, transform_indices = @transform_3, window_bounds = array<i64: 32, 32>}, {pipeline_mode = #tpu.pipeline_mode<synchronous>, transform_indices = @transform_4, window_bounds = array<i64: 1, 32>}, {pipeline_mode = #tpu.pipeline_mode<synchronous>, transform_indices = @transform_5, window_bounds = array<i64: 32, 128>}, {pipeline_mode = #tpu.pipeline_mode<synchronous>, transform_indices = @transform_6, window_bounds = array<i64: 1, 128>}, {transform_indices = @transform_7, window_bounds = array<i64: 16, 128>}]} {
    %c0 = arith.constant 0 : index
    %c0_0 = arith.constant 0 : index
    %0 = vector.load %arg1[%c0, %c0_0] : memref<16x32xbf16, #tpu.memory_space<vmem>>, vector<16x32xbf16>
    %c0_1 = arith.constant 0 : index
    %c0_2 = arith.constant 0 : index
    %1 = vector.load %arg2[%c0_1, %c0_2] : memref<32x32xbf16, #tpu.memory_space<vmem>>, vector<32x32xbf16>
    %cst = arith.constant dense<0.000000e+00> : vector<16x32xf32>
    %2 = tpu.matmul %0, %1, %cst {dimension_numbers = #tpu.dot_dimension_numbers<[1], [0], [0], [1], [0, 0, 1, 1], [], []>} : vector<16x32xbf16>, vector<32x32xbf16>, vector<16x32xf32> -> vector<16x32xf32>
    %c0_3 = arith.constant 0 : index
    %c0_4 = arith.constant 0 : index
    %3 = vector.load %arg3[%c0_3, %c0_4] : memref<1x32xf32, #tpu.memory_space<vmem>>, vector<1x32xf32>
    %4 = vector.broadcast %3 : vector<1x32xf32> to vector<16x32xf32>
    %5 = arith.addf %2, %4 : vector<16x32xf32>
    %cst_5 = arith.constant 1.000000e-03 : f32
    %6 = vector.broadcast %cst_5 : f32 to vector<16x32xf32>
    %7 = arith.mulf %6, %5 : vector<16x32xf32>
    %8 = arith.maximumf %5, %7 : vector<16x32xf32>
    %cst_6 = arith.constant dense<0.000000e+00> : vector<16xf32>
    %9 = vector.multi_reduction <add>, %8, %cst_6 [1] : vector<16x32xf32> to vector<16xf32>
    %10 = vector.shape_cast %9 : vector<16xf32> to vector<16x1xf32>
    %11 = arith.mulf %8, %8 : vector<16x32xf32>
    %cst_7 = arith.constant dense<0.000000e+00> : vector<16xf32>
    %12 = vector.multi_reduction <add>, %11, %cst_7 [1] : vector<16x32xf32> to vector<16xf32>
    %13 = vector.shape_cast %12 : vector<16xf32> to vector<16x1xf32>
    %cst_8 = arith.constant 3.125000e-02 : f32
    %14 = vector.broadcast %cst_8 : f32 to vector<16x1xf32>
    %15 = arith.mulf %10, %14 : vector<16x1xf32>
    %cst_9 = arith.constant 3.125000e-02 : f32
    %16 = vector.broadcast %cst_9 : f32 to vector<16x1xf32>
    %17 = arith.mulf %13, %16 : vector<16x1xf32>
    %18 = arith.mulf %15, %15 : vector<16x1xf32>
    %19 = arith.subf %17, %18 : vector<16x1xf32>
    %cst_10 = arith.constant 0.000000e+00 : f32
    %20 = vector.broadcast %cst_10 : f32 to vector<16x1xf32>
    %21 = arith.maximumf %19, %20 : vector<16x1xf32>
    %22 = vector.broadcast %15 : vector<16x1xf32> to vector<16x32xf32>
    %23 = arith.subf %8, %22 : vector<16x32xf32>
    %cst_11 = arith.constant 9.99999974E-6 : f32
    %24 = vector.broadcast %cst_11 : f32 to vector<16x1xf32>
    %25 = arith.addf %21, %24 : vector<16x1xf32>
    %26 = math.rsqrt %25 : vector<16x1xf32>
    %27 = vector.broadcast %26 : vector<16x1xf32> to vector<16x32xf32>
    %28 = arith.mulf %23, %27 : vector<16x32xf32>
    %29 = arith.truncf %28 : vector<16x32xf32> to vector<16x32xbf16>
    %c0_12 = arith.constant 0 : index
    %c0_13 = arith.constant 0 : index
    %30 = vector.load %arg4[%c0_12, %c0_13] : memref<32x32xbf16, #tpu.memory_space<vmem>>, vector<32x32xbf16>
    %cst_14 = arith.constant dense<0.000000e+00> : vector<16x32xf32>
    %31 = tpu.matmul %29, %30, %cst_14 {dimension_numbers = #tpu.dot_dimension_numbers<[1], [0], [0], [1], [0, 0, 1, 1], [], []>} : vector<16x32xbf16>, vector<32x32xbf16>, vector<16x32xf32> -> vector<16x32xf32>
    %c0_15 = arith.constant 0 : index
    %c0_16 = arith.constant 0 : index
    %32 = vector.load %arg5[%c0_15, %c0_16] : memref<1x32xf32, #tpu.memory_space<vmem>>, vector<1x32xf32>
    %33 = vector.broadcast %32 : vector<1x32xf32> to vector<16x32xf32>
    %34 = arith.addf %31, %33 : vector<16x32xf32>
    %cst_17 = arith.constant 1.000000e-03 : f32
    %35 = vector.broadcast %cst_17 : f32 to vector<16x32xf32>
    %36 = arith.mulf %35, %34 : vector<16x32xf32>
    %37 = arith.maximumf %34, %36 : vector<16x32xf32>
    %cst_18 = arith.constant dense<0.000000e+00> : vector<16xf32>
    %38 = vector.multi_reduction <add>, %37, %cst_18 [1] : vector<16x32xf32> to vector<16xf32>
    %39 = vector.shape_cast %38 : vector<16xf32> to vector<16x1xf32>
    %40 = arith.mulf %37, %37 : vector<16x32xf32>
    %cst_19 = arith.constant dense<0.000000e+00> : vector<16xf32>
    %41 = vector.multi_reduction <add>, %40, %cst_19 [1] : vector<16x32xf32> to vector<16xf32>
    %42 = vector.shape_cast %41 : vector<16xf32> to vector<16x1xf32>
    %cst_20 = arith.constant 3.125000e-02 : f32
    %43 = vector.broadcast %cst_20 : f32 to vector<16x1xf32>
    %44 = arith.mulf %39, %43 : vector<16x1xf32>
    %cst_21 = arith.constant 3.125000e-02 : f32
    %45 = vector.broadcast %cst_21 : f32 to vector<16x1xf32>
    %46 = arith.mulf %42, %45 : vector<16x1xf32>
    %47 = arith.mulf %44, %44 : vector<16x1xf32>
    %48 = arith.subf %46, %47 : vector<16x1xf32>
    %cst_22 = arith.constant 0.000000e+00 : f32
    %49 = vector.broadcast %cst_22 : f32 to vector<16x1xf32>
    %50 = arith.maximumf %48, %49 : vector<16x1xf32>
    %51 = vector.broadcast %44 : vector<16x1xf32> to vector<16x32xf32>
    %52 = arith.subf %37, %51 : vector<16x32xf32>
    %cst_23 = arith.constant 9.99999974E-6 : f32
    %53 = vector.broadcast %cst_23 : f32 to vector<16x1xf32>
    %54 = arith.addf %50, %53 : vector<16x1xf32>
    %55 = math.rsqrt %54 : vector<16x1xf32>
    %56 = vector.broadcast %55 : vector<16x1xf32> to vector<16x32xf32>
    %57 = arith.mulf %52, %56 : vector<16x32xf32>
    %58 = arith.truncf %57 : vector<16x32xf32> to vector<16x32xbf16>
    %c0_24 = arith.constant 0 : index
    %c0_25 = arith.constant 0 : index
    %59 = vector.load %arg6[%c0_24, %c0_25] : memref<32x128xbf16, #tpu.memory_space<vmem>>, vector<32x128xbf16>
    %cst_26 = arith.constant dense<0.000000e+00> : vector<16x128xf32>
    %60 = tpu.matmul %58, %59, %cst_26 {dimension_numbers = #tpu.dot_dimension_numbers<[1], [0], [0], [1], [0, 0, 1, 1], [], []>} : vector<16x32xbf16>, vector<32x128xbf16>, vector<16x128xf32> -> vector<16x128xf32>
    %c0_27 = arith.constant 0 : index
    %c0_28 = arith.constant 0 : index
    %61 = vector.load %arg7[%c0_27, %c0_28] : memref<1x128xf32, #tpu.memory_space<vmem>>, vector<1x128xf32>
    %62 = vector.broadcast %61 : vector<1x128xf32> to vector<16x128xf32>
    %63 = arith.addf %60, %62 : vector<16x128xf32>
    %c0_29 = arith.constant 0 : index
    %c0_30 = arith.constant 0 : index
    %64 = vector.load %arg8[%c0_29, %c0_30] : memref<16x128xf32, #tpu.memory_space<vmem>>, vector<16x128xf32>
    tpu.vector_store %arg8[%c0_29, %c0_30], %63 {strides = array<i32>} : memref<16x128xf32, #tpu.memory_space<vmem>>, vector<16x128xf32>,
    return
  }
  func.func @transform_0(%arg0: i32) -> (i32, i32) {
    %c0_i32 = arith.constant 0 : i32
    %c0_i32_0 = arith.constant 0 : i32
    return %arg0, %c0_i32 : i32, i32
  }
  func.func @transform_1(%arg0: i32) -> (i32, i32) {
    %c0_i32 = arith.constant 0 : i32
    %c0_i32_0 = arith.constant 0 : i32
    %c0_i32_1 = arith.constant 0 : i32
    return %c0_i32, %c0_i32_0 : i32, i32
  }
  func.func @transform_2(%arg0: i32) -> (i32, i32) {
    %c0_i32 = arith.constant 0 : i32
    %c0_i32_0 = arith.constant 0 : i32
    %c0_i32_1 = arith.constant 0 : i32
    return %c0_i32, %c0_i32_0 : i32, i32
  }
  func.func @transform_3(%arg0: i32) -> (i32, i32) {
    %c0_i32 = arith.constant 0 : i32
    %c0_i32_0 = arith.constant 0 : i32
    %c0_i32_1 = arith.constant 0 : i32
    return %c0_i32, %c0_i32_0 : i32, i32
  }
  func.func @transform_4(%arg0: i32) -> (i32, i32) {
    %c0_i32 = arith.constant 0 : i32
    %c0_i32_0 = arith.constant 0 : i32
    %c0_i32_1 = arith.constant 0 : i32
    return %c0_i32, %c0_i32_0 : i32, i32
  }
  func.func @transform_5(%arg0: i32) -> (i32, i32) {
    %c0_i32 = arith.constant 0 : i32
    %c0_i32_0 = arith.constant 0 : i32
    %c0_i32_1 = arith.constant 0 : i32
    return %c0_i32, %c0_i32_0 : i32, i32
  }
  func.func @transform_6(%arg0: i32) -> (i32, i32) {
    %c0_i32 = arith.constant 0 : i32
    %c0_i32_0 = arith.constant 0 : i32
    %c0_i32_1 = arith.constant 0 : i32
    return %c0_i32, %c0_i32_0 : i32, i32
  }
  func.func @transform_7(%arg0: i32) -> (i32, i32) {
    %c0_i32 = arith.constant 0 : i32
    %c0_i32_0 = arith.constant 0 : i32
    return %arg0, %c0_i32 : i32, i32
  }
}

</mosaic_0001>

<bundles_post_ra>
// kernel: tpu_custom_call.1
= control target key start
LH: loop header
LB: loop body
LE: loop exit
PB: predicated region body
PF: predicated region fallthrough
CT: control target
= control target key end

     0   :  { %s1384_s0 = inlined_call_operand.hbm [shape: bf16[32,32], index: 0, kind: input, shape index: {}]   ;;  %s1385_s1 = inlined_call_operand.hbm [shape: bf16[32,32], index: 1, kind: input, shape index: {}]   ;;  %s1386_s2 = inlined_call_operand.vmem [shape: f32[1,32], index: 2, kind: input, shape index: {}]   ;;  %s1387_s3 = inlined_call_operand.hbm [shape: bf16[32,32], index: 3, kind: input, shape index: {}]   ;;  %s1388_s4 = inlined_call_operand.vmem [shape: f32[1,32], index: 4, kind: input, shape index: {}]   ;;  %s1389_s5 = inlined_call_operand.hbm [shape: bf16[32,128], index: 5, kind: input, shape index: {}]   ;;  %s1390_s6 = inlined_call_operand.vmem [shape: f32[1,128], index: 6, kind: input, shape index: {}]   ;;  %s1391_s7 = inlined_call_operand.hbm [shape: f32[32,128], index: 7, kind: output, shape index: {}]  }
   0x1   :  { %1398 = sst [smem:[#allocation15_spill]] %s1385_s1 }
   0x2   :  { %12 = vsyncpa [#allocation3], 0 }
   0x3   :  { %14 = vsyncpa [#allocation3 + $0x1], 0 }
   0x4   :  { %15 = vsyncpa [#allocation6], 0 }
   0x5   :  { %16 = vsyncpa [#allocation9], 0 }
   0x6   :  { %17 = vsyncpa [#allocation4], 0 }
   0x7   :  { %19 = vsyncpa [#allocation4 + $0x1], 0  ;;  %s1142_s24 = smov 0   ;;  %s1144_s25 = smov 0  }
   0x8   :  { %s1146_s26 = smov 0   ;;  %s1148_s27 = smov 0  }
   0x9 LB: > { %s1163_s28 = sadd.s32 4294967295, %s1089_s27   ;;  %s745_s29 = sadd.s32 4294967294, %s1089_s27   ;;  %s1089_s27 = sphi %s1148_s27, %s1420_s27   ;;  %s1085_s26 = sphi %s1146_s26, %s1419_s26   ;;  %s1081_s25 = sphi %s1144_s25, %s1418_s25   ;;  %s1077_s24 = sphi %s1142_s24, %s1417_s24  }
   0xa   : > { %p45_p0 = scmp.ne.s32.totalorder %s1081_s25, %s1077_s24  ;;  %p1392_p1 = scmp.eq.s32.totalorder %s1163_s28, 0 }
   0xb   : > { %p195_p2 = scmp.eq.s32.totalorder %s1163_s28, 1  ;;  %p201_p3 = scmp.eq.s32.totalorder %s745_s29, 1 }
   0xc   : > { %p1172_p4 = por %p1392_p1, %p45_p0  ;;  %p746_p5 = scmp.ge.s32.totalorder %s1089_s27, 1 }
   0xd   : > { %p1177_p6 = por %p201_p3, %p45_p0  ;;  %p208_p7 = scmp.lt.s32.totalorder %s1089_s27, 3 }
   0xe   : > { %s1399_s30 = scalar_select %p1172_p4, 1, 0 }
   0xf   : > { %s1400_s8 = scalar_select %p1177_p6, 1, 0 }
  0x10   : > { %p1182_p8 = pnand %p746_p5, %p208_p7  ;;  %s1091_s10 = smov [#allocation5]  }
  0x11   : > { %s220_s11 = sshll.u32 %s1091_s10, 4  ;;  %s1092_s13 = smov [#allocation7]   ;;  %s221_s11 = int_to_ptr.vmem [resolvable:$true] %s220_s11 }
  0x12   : > { %s1401_s9 = scalar_select %p1182_p8, 1, 0 }
  0x13   : > { %p829_p9 = pneg %p1182_p8  ;;  %s236_s14 = sshll.u32 %s1092_s13, 4  ;;  %s237_s14 = int_to_ptr.vmem [resolvable:$true] %s236_s14 }
  0x14   : > { %s1093_s15 = smov [#allocation8]   ;;  %s922_s17 = scalar_lea.vmem %s221_s11, 256 }
  0x15   : > { %p1191_p11 = pnand %p829_p9, %p1392_p1  ;;  %s252_s16 = sshll.u32 %s1093_s15, 4  ;;  %s253_s16 = int_to_ptr.vmem [resolvable:$true] %s252_s16 }
  0x16   : > { %p923_p13 = scmp.ne.s32.totalorder %s221_s11, %s922_s17  ;;  %p930_p5 = scmp.lt.s32.totalorder %s221_s11, %s221_s11 }
  0x17   : > { %p913_p12 = pneg %p1191_p11  ;;  %p931_p7 = scmp.lt.s32.totalorder %s922_s17, %s922_s17 }
  0x19   : > { %p925_p0 = pnand %p923_p13, %p913_p12  ;;  %p932_p9 = por %p931_p7, %p930_p5 }
  0x1b   : > { %p926_p3 = pneg %p925_p0 }
  0x1d   : > { %p933_p10 = pnand %p932_p9, %p926_p3 }
  0x1f   : > { %936 = shalt.err (!%p933_p10)
}
  0x20   : > { %s1393_s18 = smov 64   ;;  %s1394_s19 = smov 4  }
  0x21   : > { %s1403_s1 = sld [smem:[#allocation15_spill]]  ;;  %s948_s22 = scalar_lea.vmem %s237_s14, 256 }
  0x22   : > { %p949_p13 = scmp.ne.s32.totalorder %s237_s14, %s948_s22  ;;  %p956_p3 = scmp.lt.s32.totalorder %s237_s14, %s237_s14 }
  0x23   : > { %p957_p10 = scmp.lt.s32.totalorder %s948_s22, %s948_s22 }
  0x24   : > { %p951_p0 = pnand %p949_p13, %p913_p12 }
  0x25   : > { %p958_p7 = por %p957_p10, %p956_p3 }
  0x26   : > { %p952_p5 = pneg %p951_p0 }
  0x27   : > { %832 = dma.hbm_to_vmem [thread:$0]  (!%p1191_p11), %s1403_s1, 256, %s221_s11, [#allocation6], %s1393_s18, %s1393_s18, %s1394_s19  }
  0x28   : > { %p959_p9 = pnand %p958_p7, %p952_p5 }
  0x2a   : > { %962 = shalt.err (!%p959_p9)
}
  0x2b   : > { %835 = dma.hbm_to_vmem [thread:$0]  (!%p1191_p11), %s1387_s3, 256, %s237_s14, [#allocation6], %s1393_s18, %s1393_s18, %s1394_s19  }
  0x2c   : > { %s974_s10 = scalar_lea.vmem %s253_s16, 256  ;;  %p982_p3 = scmp.lt.s32.totalorder %s253_s16, %s253_s16 }
  0x2d   : > { %p975_p1 = scmp.ne.s32.totalorder %s253_s16, %s974_s10  ;;  %p983_p5 = scmp.lt.s32.totalorder %s974_s10, %s974_s10 }
  0x2f   : > { %p977_p13 = pnand %p975_p1, %p913_p12  ;;  %p984_p10 = por %p983_p5, %p982_p3 }
  0x31   : > { %p978_p0 = pneg %p977_p13 }
  0x33   : > { %p985_p7 = pnand %p984_p10, %p978_p0 }
  0x35   : > { %988 = shalt.err (!%p985_p7)
}
  0x36   : > { %838 = dma.hbm_to_vmem [thread:$0]  (!%p1191_p11), %s1389_s5, 256, %s253_s16, [#allocation9], %s1393_s18, %s1393_s18, %s1394_s19  }
  0x37   : > { %s1231_s14 = sadd.s32 1, %s1089_s27   ;;  %s32_s15 = sadd.s32 1, %s1085_s26 }
  0x38   : > { %s29_s12 = ssub.s32 %s1089_s27, %s1231_s14  ;;  %p39_p12 = scmp.ne.s32.totalorder %s1085_s26, %s1081_s25 }
  0x39   : > { %p30_p1 = scmp.eq.s32.totalorder %s29_s12, 0  ;;  %p40_p9 = scmp.eq.s32.totalorder %s1089_s27, 0 }
  0x3a   : > { %p850_p13 = scmp.lt.s32.totalorder %s1089_s27, 2  ;;  %p1245_p3 = por %p195_p2, %p39_p12 }
  0x3b   : > { %s1241_s17 = scalar_select %p30_p1, %s1085_s26, %s32_s15  }
  0x3c   : > { %p41_p0 = por %p40_p9, %p39_p12  ;;  %s269_s21 = sand.u32 1, %s1085_s26  }
  0x3d   : > { %s1404_s20 = scalar_select %p1245_p3, 1, 0 }
  0x3e   : > { %s778_s22 = sshll.u32 %s1089_s27, 7  ;;  %s751_s16 = sshll.u32 %s269_s21, 3 }
  0x3f   : > { %s1254_s10 = scalar_lea.hbm %s1384_s0, %s778_s22  ;;  %s273_s11 = scalar_lea.vmem [#allocation2], %s751_s16 }
  0x40   : > { %s280_s13 = sshll.u32 %s273_s11, 4  ;;  %p1256_p11 = pnand %p850_p13, %p41_p0  ;;  %s1260_s13 = int_to_ptr.vmem [resolvable:$true] %s280_s13 }
  0x41   : > { %s1262_s15 = scalar_lea.sflag [#allocation3], %s269_s21  ;;  %s989_s18 = scalar_lea.hbm %s1254_s10, 128 }
  0x42   : > { %p990_p2 = scmp.ne.s32.totalorder %s1254_s10, %s989_s18  ;;  %p991_p5 = pneg %p1256_p11 }
  0x43   : > { %s994_s16 = scalar_lea.hbm %s1384_s0, 256  ;;  %p995_p1 = scmp.lt.s32.totalorder %s1254_s10, %s1384_s0 }
  0x44   : > { %p992_p10 = pnand %p991_p5, %p990_p2  ;;  %p996_p12 = scmp.lt.s32.totalorder %s994_s16, %s989_s18 }
  0x46   : > { %p993_p7 = pneg %p992_p10  ;;  %p997_p9 = por %p996_p12, %p995_p1 }
  0x48   : > { %p998_p13 = pnand %p997_p9, %p993_p7 }
  0x4a   : > { %1001 = shalt.err (!%p998_p13)
}
  0x4b   : > { %s1002_s21 = scalar_lea.vmem %s1260_s13, 128  ;;  %s1096_s19 = smov [#allocation2]  }
  0x4c   : > { %p1003_p0 = scmp.ne.s32.totalorder %s1260_s13, %s1002_s21  ;;  %s1007_s1 = sshll.u32 %s1096_s19, 4  ;;  %s1008_s1 = int_to_ptr.vmem [resolvable:$false] %s1007_s1 }
  0x4d   : > { %s1009_s22 = scalar_lea.vmem %s1008_s1, 256  ;;  %p1010_p10 = scmp.lt.s32.totalorder %s1260_s13, %s1008_s1 }
  0x4e   : > { %p1005_p6 = pnand %p1003_p0, %p991_p5  ;;  %p1011_p3 = scmp.lt.s32.totalorder %s1009_s22, %s1002_s21 }
  0x50   : > { %p1006_p2 = pneg %p1005_p6  ;;  %p1012_p4 = por %p1011_p3, %p1010_p10 }
  0x52   : > { %p1013_p8 = pnand %p1012_p4, %p1006_p2 }
  0x54   : > { %1016 = shalt.err (!%p1013_p8)
}
  0x55   : > { %s1406_s18 = smov 4   ;;  %s1407_s23 = smov 64  }
  0x56   : > { %842 = dma.hbm_to_vmem [thread:$0]  (!%p1256_p11), %s1254_s10, 128, %s1260_s13, %s1262_s15, %s1407_s23, %s1407_s23, %s1406_s18  }
  0x57   : > { %p1408_p6 = scmp.ne.s32.totalorder %s1401_s9, 0 }
  0x58   : > { %s1289_s19 = sand.u32 (!%p1408_p6), 1, %s1081_s25   ;;  %p1409_p4 = scmp.ne.s32.totalorder (!%p1408_p6), %s1399_s30, 0 }
  0x59   : > { %292 = sbr.rel (%p1408_p6) target bundleno = 1067 (0x42b), region = 48  ;;  %s755_s1 = sshll.u32 (!%p1408_p6), %s1289_s19, 3 }
  0x5a   : > { %s295_s16 = scalar_lea.sflag (!%p1408_p6), [#allocation3], %s1289_s19  ;;  %s298_s29 = scalar_lea.vmem (!%p1408_p6), [#allocation2], %s755_s1 }
  0x5e   : > { %1060 = dma.done.wait (%p1409_p4), %s295_s16, 128  }
  0x5f   : > { %1062 = vsyncadd (%p1409_p4), %s295_s16, 4294967168  ;;  %p1410_p8 = scmp.eq.s32.totalorder %s1163_s28, 0 }
  0x61   : > { %1064 = dma.done.wait (%p1410_p8), [#allocation6], 512   ;;  %p1411_p3 = pmov %p1410_p8 }
  0x63   : > { %1066 = vsyncadd (%p1411_p3), [#allocation6], 4294966784  ;;  %p1412_p11 = pmov %p1411_p3 }
  0x64   : > { %p1413_p5 = pmov %p1411_p3 }
  0x65   : > { %1068 = dma.done.wait (%p1412_p11), [#allocation9], 256  }
  0x66   : > { %1070 = vsyncadd (%p1413_p5), [#allocation9], 4294967040  ;;  %v1097_v0 = vmov 0.0   ;;  %vm1098_vm0 = vmmov 0   ;;  %v896_v1 = vld [vmem:[#allocation5 + $0x8] sm:$0xff]   ;;  %v897_v2 = vld [vmem:[#allocation5] sm:$0xff]  }
  0x67   : > { %789 = vmatprep.subr.bf16.mxu0 %v1097_v0  ;;  %793 = vmatprep.mubr.msk.bf16.mxu0 %vm1098_vm0, %v1097_v0  ;;  %v898_v3 = vld [vmem:[%s298_s29] sm:$0xff]   ;;  %vm374_vm1 = vcmask 261120   ;;  %v901_v63 = vld [vmem:[#allocation8 + $0x8] sm:$0xff]   ;;  %s759_s12 = sshll.u32 %s1289_s19, 4  ;;  %s779_s18 = sshll.u32 %s1163_s28, 8 }
  0x68   : > { %797 = vmatprep.subr.bf16.mxu1 %v1097_v0  ;;  %801 = vmatprep.mubr.msk.bf16.mxu1 %vm1098_vm0, %v1097_v0  ;;  %v760_v4 = vld [vmem:[%s1386_s2] ss:$0 sm:$0xff]  ;;  %v899_v21 = vld [vmem:[#allocation7 + $0x8] sm:$0xff]   ;;  %s340_s21 = scalar_lea.vmem [#allocation10], %s759_s12  ;;  %s1341_s16 = scalar_lea.hbm %s1391_s7, %s779_s18 }
  0x69   : > { %790 = vmatpush3.bf16.msra.mxu0 %v896_v1  ;;  %798 = vmatpush3.bf16.msra.mxu1 %v899_v21  ;;  %v900_v22 = vld [vmem:[#allocation7] sm:$0xff]   ;;  %v902_v1 = vld [vmem:[#allocation8] sm:$0xff]   ;;  %s643_s22 = sshll.u32 %s340_s21, 4  ;;  %s630_s29 = scalar_lea.sflag [#allocation4], %s1289_s19  ;;  %s1336_s22 = int_to_ptr.vmem [resolvable:$true] %s643_s22 }
  0x6a   : > { %791 = vmatprep.subr.bf16.mxu0 %v1097_v0  ;;  %799 = vmatprep.subr.bf16.mxu1 %v1097_v0  ;;  %v765_v46 = vld [vmem:[%s1388_s4] ss:$0 sm:$0xff]  ;;  %s1017_s30 = scalar_lea.vmem %s1336_s22, 256  ;;  %p1414_p1 = scmp.ne.s32.totalorder %s1404_s20, 0 }
  0x6b   : > { %p1018_p7 = scmp.ne.s32.totalorder %s1336_s22, %s1017_s30  ;;  %s1099_s28 = smov [#allocation10]  }
  0x6c   : > { %s1021_s9 = sshll.u32 %s1099_s28, 4  ;;  %s1022_s9 = int_to_ptr.vmem [resolvable:$false] %s1021_s9 }
  0x6d   : > { %792 = vmatpush3.bf16.msra.mxu0 %v897_v2  ;;  %800 = vmatpush3.bf16.msra.mxu1 %v900_v22  ;;  %p1019_p12 = pnand %p1018_p7, %p1414_p1  ;;  %s1023_s10 = scalar_lea.vmem %s1022_s9, 512 }
  0x6e   : > { %805 = vmatprep.subr.bf16.mxu0 %v1097_v0  ;;  %p1024_p13 = scmp.lt.s32.totalorder %s1336_s22, %s1022_s9  ;;  %p1025_p0 = scmp.lt.s32.totalorder %s1023_s10, %s1017_s30 }
  0x6f   : > { %p1020_p9 = pneg %p1019_p12 }
  0x70   : > { %794 = vmatmul.mubr.msk.bf16.vlgmr.msra.gmra.mxu0 %vm374_vm1, %v898_v3  ;;  %p1026_p2 = por %p1025_p0, %p1024_p13 }
  0x71   : > { %809 = vmatprep.mubr.msk.bf16.mxu0 %vm1098_vm0, %v1097_v0  ;;  %806 = vmatpush3.bf16.msra.mxu0 %v901_v63 }
  0x72   : > { %807 = vmatprep.subr.bf16.mxu0 %v1097_v0  ;;  %p1027_p10 = pnand %p1026_p2, %p1020_p9 }
  0x75   : > { %808 = vmatpush3.bf16.msra.mxu0 %v902_v1 }
 0x130   : > { %v412_v5 = vpop.f32.mrf.mxu0 }
 0x131   : > { %v413_v6 = vadd.f32 %v760_v4, %v412_v5 }
 0x132   : > { %v795_v7 = vpop.f32.mrf.mxu0 }
 0x133   : > { %v419_v8 = vmul.f32 0.001, %v413_v6 }
 0x134   : > { %v415_v9 = vpop.f32.mrf.mxu0 }
 0x135   : > { %v421_v10 = vmax.f32 %v413_v6, %v419_v8  ;;  %v416_v11 = vadd.f32 %v760_v4, %v415_v9 }
 0x136   : > { %v796_v12 = vpop.f32.mrf.mxu0 }
 0x137   : > { %v420_v13 = vmul.f32 0.001, %v416_v11  ;;  %v423_v14 = vsel %vm374_vm1, %v421_v10, 0.0  ;;  %v429_v15 = vmul.f32 %v421_v10, %v421_v10 }
 0x138   : > { %424 = vadd.xlane.f32.xlu0 %v423_v14 }
 0x139   : > { %v422_v16 = vmax.f32 %v416_v11, %v420_v13  ;;  %v431_v17 = vsel %vm374_vm1, %v429_v15, 0.0 }
 0x13a   : > { %432 = vadd.xlane.f32.xlu1 %v431_v17 }
 0x13b   : > { %v426_v18 = vsel %vm374_vm1, %v422_v16, 0.0  ;;  %v430_v19 = vmul.f32 %v422_v16, %v422_v16 }
 0x13c   : > { %427 = vadd.xlane.f32.xlu0 %v426_v18 }
 0x13d   : > { %v434_v20 = vsel %vm374_vm1, %v430_v19, 0.0 }
 0x13e   : > { %435 = vadd.xlane.f32.xlu1 %v434_v20 }
 0x1c1   : > { %v425_v23 = vpop.xlane.xlu0 %424 }
 0x1c2   : > { %v437_v24 = vmul.f32 0.03125, %v425_v23 }
 0x1c3   : > { %v433_v25 = vpop.xlane.xlu1 %432 }
 0x1c4   : > { %v441_v26 = vmul.f32 %v437_v24, %v437_v24  ;;  %v439_v27 = vmul.f32 0.03125, %v433_v25  ;;  %v447_v40 = vsub.f32 %v421_v10, %v437_v24  ;;  %v769_v24 = vld [vmem:[%s1390_s6] ss:$0 sm:$0xff] }
 0x1c5   : > { %v428_v28 = vpop.xlane.xlu0 %427 }
 0x1c6   : > { %v443_v29 = vsub.f32 %v439_v27, %v441_v26  ;;  %v438_v30 = vmul.f32 0.03125, %v428_v28 }
 0x1c7   : > { %v436_v31 = vpop.xlane.xlu1 %435 }
 0x1c8   : > { %v445_v32 = vmax.f32 %v443_v29, 0.0  ;;  %v442_v33 = vmul.f32 %v438_v30, %v438_v30  ;;  %v440_v34 = vmul.f32 0.03125, %v436_v31  ;;  %v448_v41 = vsub.f32 %v422_v16, %v438_v30 }
 0x1ca   : > { %v449_v35 = vadd.f32 1e-05, %v445_v32  ;;  %v444_v36 = vsub.f32 %v440_v34, %v442_v33 }
 0x1cc   : > { %v446_v37 = vmax.f32 %v444_v36, 0.0  ;;  %903 = vrsqrt.f32 %v449_v35 }
 0x1ce   : > { %v450_v38 = vadd.f32 1e-05, %v446_v37 }
 0x1d0   : > { %905 = vrsqrt.f32 %v450_v38 }
 0x1d9   : > { %v904_v39 = vpop.eup %903 }
 0x1da   : > { %v453_v43 = vmul.f32 %v904_v39, %v447_v40 }
 0x1dd   : > { %v906_v42 = vpop.eup %905 }
 0x1de   : > { %v454_v44 = vmul.f32 %v906_v42, %v448_v41 }
 0x1e0   : > { %v455_v45 = vpack.c.bf16 %v454_v44, %v453_v43 }
 0x1e2   : > { %802 = vmatmul.mubr.msk.bf16.vlgmr.msra.gmra.mxu1 %vm374_vm1, %v455_v45 }
 0x2a2   : > { %v516_v47 = vpop.f32.mrf.mxu1 }
 0x2a3   : > { %v517_v48 = vadd.f32 %v765_v46, %v516_v47 }
 0x2a4   : > { %v803_v49 = vpop.f32.mrf.mxu1 }
 0x2a5   : > { %v523_v50 = vmul.f32 0.001, %v517_v48 }
 0x2a6   : > { %v519_v51 = vpop.f32.mrf.mxu1 }
 0x2a7   : > { %v525_v52 = vmax.f32 %v517_v48, %v523_v50  ;;  %v520_v53 = vadd.f32 %v765_v46, %v519_v51 }
 0x2a8   : > { %v804_v54 = vpop.f32.mrf.mxu1 }
 0x2a9   : > { %v524_v55 = vmul.f32 0.001, %v520_v53  ;;  %v527_v56 = vsel %vm374_vm1, %v525_v52, 0.0  ;;  %v533_v57 = vmul.f32 %v525_v52, %v525_v52 }
 0x2aa   : > { %528 = vadd.xlane.f32.xlu0 %v527_v56 }
 0x2ab   : > { %v526_v58 = vmax.f32 %v520_v53, %v524_v55  ;;  %v535_v59 = vsel %vm374_vm1, %v533_v57, 0.0 }
 0x2ad   : > { %v530_v60 = vsel %vm374_vm1, %v526_v58, 0.0  ;;  %v534_v61 = vmul.f32 %v526_v58, %v526_v58 }
 0x2ae   : > { %536 = vadd.xlane.f32.xlu0 %v535_v59  ;;  %531 = vadd.xlane.f32.xlu1 %v530_v60 }
 0x2af   : > { %v538_v62 = vsel %vm374_vm1, %v534_v61, 0.0 }
 0x2b2   : > { %539 = vadd.xlane.f32.xlu1 %v538_v62 }
 0x333   : > { %v529_v2 = vpop.xlane.xlu0 %528 }
 0x334   : > { %v541_v3 = vmul.f32 0.03125, %v529_v2 }
 0x336   : > { %v545_v6 = vmul.f32 %v541_v3, %v541_v3  ;;  %v551_v18 = vsub.f32 %v525_v52, %v541_v3 }
 0x337   : > { %v537_v4 = vpop.xlane.xlu0 %536  ;;  %v532_v5 = vpop.xlane.xlu1 %531 }
 0x338   : > { %v543_v7 = vmul.f32 0.03125, %v537_v4  ;;  %v542_v8 = vmul.f32 0.03125, %v532_v5 }
 0x33a   : > { %v547_v9 = vsub.f32 %v543_v7, %v545_v6  ;;  %v546_v12 = vmul.f32 %v542_v8, %v542_v8  ;;  %v552_v19 = vsub.f32 %v526_v58, %v542_v8 }
 0x33b   : > { %v540_v10 = vpop.xlane.xlu1 %539 }
 0x33c   : > { %v549_v11 = vmax.f32 %v547_v9, 0.0  ;;  %v544_v13 = vmul.f32 0.03125, %v540_v10 }
 0x33e   : > { %v553_v14 = vadd.f32 1e-05, %v549_v11  ;;  %v548_v15 = vsub.f32 %v544_v13, %v546_v12 }
 0x340   : > { %v550_v16 = vmax.f32 %v548_v15, 0.0  ;;  %907 = vrsqrt.f32 %v553_v14 }
 0x342   : > { %v554_v17 = vadd.f32 1e-05, %v550_v16 }
 0x344   : > { %909 = vrsqrt.f32 %v554_v17 }
 0x34d   : > { %v908_v0 = vpop.eup %907 }
 0x34e   : > { %v557_v21 = vmul.f32 %v908_v0, %v551_v18 }
 0x351   : > { %v910_v20 = vpop.eup %909 }
 0x352   : > { %v558_v22 = vmul.f32 %v910_v20, %v552_v19 }
 0x354   : > { %v559_v23 = vpack.c.bf16 %v558_v22, %v557_v21 }
 0x356   : > { %810 = vmatmul.mubr.msk.bf16.vlgmr.msra.gmra.mxu0 %vm374_vm1, %v559_v23 }
 0x416   : > { %v620_v25 = vpop.f32.mrf.mxu0 }
 0x417   : > { %v621_v26 = vadd.f32 %v769_v24, %v620_v25 }
 0x418   : > { %v811_v27 = vpop.f32.mrf.mxu0 }
 0x419   : > { %627 = vst [vmem:[%s340_s21] sm:$0xff] %v621_v26 }
 0x41a   : > { %v623_v28 = vpop.f32.mrf.mxu0 }
 0x41b   : > { %v624_v29 = vadd.f32 %v769_v24, %v623_v28 }
 0x41c   : > { %v812_v30 = vpop.f32.mrf.mxu0 }
 0x41d   : > { %628 = vst [vmem:[%s340_s21 + $0x8] sm:$0xff] %v624_v29 }
 0x41e   : > { %1030 = shalt.err (!%p1027_p10)
}
 0x41f   : > { %s1031_s13 = scalar_lea.hbm %s1341_s16, 256  ;;  %s1035_s11 = scalar_lea.hbm %s1391_s7, 512 }
 0x420   : > { %p1032_p6 = scmp.ne.s32.totalorder %s1341_s16, %s1031_s13  ;;  %p1036_p3 = scmp.lt.s32.totalorder %s1341_s16, %s1391_s7 }
 0x421   : > { %p1037_p11 = scmp.lt.s32.totalorder %s1035_s11, %s1031_s13 }
 0x422   : > { %p1033_p4 = pnand %p1032_p6, %p1414_p1 }
 0x423   : > { %p1038_p5 = por %p1037_p11, %p1036_p3 }
 0x424   : > { %p1034_p8 = pneg %p1033_p4 }
 0x426   : > { %p1039_p7 = pnand %p1038_p5, %p1034_p8 }
 0x428   : > { %1042 = shalt.err (!%p1039_p7)
}
 0x429   : > { %s1100_s23 = smov 128   ;;  %s1101_s1 = smov 8  }
 0x42a   : > { %827 = dma.vmem_to_hbm [thread:$0]  (%p1414_p1), %s1336_s22, 256, %s1341_s16, %s630_s29, %s1100_s23, %s1100_s23, %s1101_s1  }
 0x42b PF: > { %s658_s30 = sand.u32 1, %s1077_s24   ;;  %p1415_p12 = scmp.ne.s32.totalorder %s1400_s8, 0 }
 0x42c   : > { %p1416_p9 = scmp.ge.s32.totalorder %s1089_s27, 2  ;;  %s659_s28 = scalar_lea.sflag [#allocation4], %s658_s30 }
 0x42e   : > { %p844_p13 = pnand %p1416_p9, %p1415_p12 }
 0x430   : > { %p845_p0 = pneg %p844_p13 }
 0x432   : > { %1072 = dma.done.wait (%p845_p0), %s659_s28, 256  }
 0x433   : > { %1074 = vsyncadd (%p845_p0), %s659_s28, 4294967040  ;;  %p22_p2 = scmp.ge.s32.totalorder %s1231_s14, 4   ;;  %s1417_s24 = smov %s1081_s25 }
 0x434   : > { %s1418_s25 = smov %s1085_s26  ;;  %s1419_s26 = smov %s1241_s17 }
 0x435   : > { %s1420_s27 = smov %s1231_s14  ;;  %24 = sbr.rel (!%p22_p2) target bundleno = 9 (0x9), region = 105 }
 0x43a   :  { %664 = vsyncpa [#allocation3], 1 }
 0x43b   :  { %666 = vsyncpa [#allocation3 + $0x1], 1 }
 0x43c   :  { %667 = vsyncpa [#allocation6], 1 }
 0x43d   :  { %668 = vsyncpa [#allocation9], 1 }
 0x43e   :  { %669 = vsyncpa [#allocation4], 1 }
 0x43f   :  { %671 = vsyncpa [#allocation4 + $0x1], 1 }

</bundles_post_ra>
